<compile_context>
chip_gen: v5e
topology: v5e:2x2
jax: 0.10.0
libtpu: 0.0.40
codegen_flags: <defaults>
</compile_context>

<pallas_src>
import functools

import jax
import jax.numpy as jnp
from jax import lax
from jax.experimental import pallas as pl
from jax.experimental.pallas import tpu as pltpu


def _round_up(n, m):
    return ((n + m - 1) // m) * m


def _moe_fused_kernel(x_ref, w_ref, b_ref, out_ref, *, E, C, GP, CP):
    # x: (Bt, D) bf16; w: (D, GP + E*CP) bf16; b: (1, GP + E*CP) f32.
    x = x_ref[...]

    # ---- one fused MXU matmul (bf16 operands, f32 accumulation) + one bias add ----
    # fused columns: [ gate (GP) | expert_0 (CP) | ... | expert_{E-1} (CP) ]
    y = jnp.dot(x, w_ref[...], preferred_element_type=jnp.float32) + b_ref[...]

    # ---- gate softmax over experts (all f32 math) ----
    # Pad lanes E..GP carry bias = -inf  ->  exp() = 0: they never affect max/sum.
    g = y[:, :GP]                                    # 128-aligned whole-vreg view
    g = g - jnp.max(g, axis=1, keepdims=True)
    ge = jnp.exp(g)
    p = ge * pl.reciprocal(jnp.sum(ge, axis=1, keepdims=True), approx=False)   # (Bt, GP)

    # ---- pre-softmax expectation: per-expert FMA over 128-aligned slices ----
    s = p[:, 0:1] * y[:, GP:GP + CP]
    for e in range(1, E):
        lo = GP + e * CP
        s = s + p[:, e:e + 1] * y[:, lo:lo + CP]

    # ---- final class softmax (exact reciprocal -> rows sum to 1) ----
    if C != CP:
        lane = lax.broadcasted_iota(jnp.int32, s.shape, 1)
        s = jnp.where(lane < C, s, -jnp.inf)         # kill the zero pad lanes
    s = s - jnp.max(s, axis=1, keepdims=True)
    es = jnp.exp(s)
    out_ref[...] = es * pl.reciprocal(jnp.sum(es, axis=1, keepdims=True), approx=False)


def _fuse_params(expert_w, expert_b, gate_w, gate_b, *, GP, CP):
    """128-lane-aligned fused weight/bias, built once in the wrapper.

    Columns: [ gate (E, padded to GP) | expert_0 (C, padded to CP) | ... ].
    Gate pad bias = -inf (vanishes in the gate softmax); expert pads are zero
    (masked to -inf in-kernel before the class softmax).  Weights cast to bf16
    (native MXU dtype); biases stay f32 and are added after f32 accumulation.
    """
    E, D, C = expert_w.shape
    gate_w_p = jnp.zeros((D, GP), jnp.float32).at[:, :E].set(gate_w.astype(jnp.float32))
    gate_b_p = jnp.full((1, GP), -jnp.inf, jnp.float32).at[:, :E].set(
        gate_b.reshape(1, E).astype(jnp.float32))
    exp_w_p = jnp.zeros((E, D, CP), jnp.float32).at[:, :, :C].set(expert_w.astype(jnp.float32))
    exp_b_p = jnp.zeros((E, 1, CP), jnp.float32).at[:, :, :C].set(expert_b.astype(jnp.float32))
    w_fused = jnp.concatenate(
        [gate_w_p, jnp.transpose(exp_w_p, (1, 0, 2)).reshape(D, E * CP)], axis=1)
    b_fused = jnp.concatenate([gate_b_p, exp_b_p.reshape(1, E * CP)], axis=1)
    # NOTE: below bf16, use fp8 weights on v7x (no integer MXU path there); int8
    # is only an option on v5e/v6e.
    return w_fused.astype(jnp.bfloat16), b_fused


def _vmem_limit_bytes(bt, D, F, CP):
    io = (2 * bt * D * 2      # x tile (bf16) x 2 pipeline buffers
          + 1 * D * F * 2     # fused weights (bf16), single-buffered / resident
          + 1 * F * 4         # fused bias (f32)
          + 2 * bt * CP * 4)  # out tile (f32) x 2
    tmp = bt * F * 4 + 4 * bt * CP * 4   # y + softmax temporaries (f32)
    # 2x headroom; never below the 32 MiB default, never above v7x's 64 MiB VMEM.
    return int(min(max(2 * (io + tmp), 32 << 20), 64 << 20))


def moe_pre_softmax_expectation(x, expert_w, expert_b, gate_w, gate_b, *, block_b=None):
    """x: (B, D); expert_w: (E, D, C); expert_b: (E, 1, C); gate_w: (D, E); gate_b: (1, E).

    block_b=None -> gridless single shot (use while the activation/output tiles
    are far from the VMEM budget).  For large B pass block_b as a multiple of
    256 (>=256 fills the 256-row MXU on v6e/v7x and amortizes the ~0.35 us/step
    grid overhead; 128-512 on v5e).
    """
    B, D = x.shape
    E, _, C = expert_w.shape
    GP = _round_up(E, 128)       # gate lanes padded to a full lane group
    CP = _round_up(C, 128)       # per-expert class lanes padded to lane groups
    F = GP + E * CP

    w_fused, b_fused = _fuse_params(expert_w, expert_b, gate_w, gate_b, GP=GP, CP=CP)
    x_bf = x.astype(jnp.bfloat16)
    kernel = functools.partial(_moe_fused_kernel, E=E, C=C, GP=GP, CP=CP)
    out_shape = jax.ShapeDtypeStruct((B, CP), jnp.float32)   # lane-dense output

    if block_b is None or block_b >= B:
        # Gridless single shot: a grid here would only add per-step overhead.
        out = pl.pallas_call(
            kernel,
            out_shape=out_shape,
            in_specs=[pl.BlockSpec(memory_space=pltpu.MemorySpace.VMEM)] * 3,
            out_specs=pl.BlockSpec(memory_space=pltpu.MemorySpace.VMEM),
            compiler_params=pltpu.CompilerParams(
                vmem_limit_bytes=_vmem_limit_bytes(B, D, F, CP)),
        )(x_bf, w_fused, b_fused)
    else:
        if B % block_b != 0:
            raise ValueError("block_b must divide B")
        # NOTE: at realistic D/C where D*F (bf16) nears ~1/4 of VMEM (64 MiB on
        # v7x), switch to an extra 'arbitrary' expert grid axis with a (D, CP)
        # weight tile + f32 VMEM accumulator instead of one resident fused weight.
        vmem = _vmem_limit_bytes(block_b, D, F, CP)

        def call_grid(weight_mode):
            kw = {} if weight_mode is None else {"pipeline_mode": weight_mode}
            return pl.pallas_call(
                kernel,
                out_shape=out_shape,
                grid=(B // block_b,),
                in_specs=[
                    pl.BlockSpec((block_b, D), lambda i: (i, 0)),   # batch-tiled activations
                    pl.BlockSpec((D, F), lambda i: (0, 0), **kw),   # resident fused weights
                    pl.BlockSpec((1, F), lambda i: (0, 0), **kw),   # resident fused bias
                ],
                out_specs=pl.BlockSpec((block_b, CP), lambda i: (i, 0)),
                compiler_params=pltpu.CompilerParams(
                    dimension_semantics=("parallel",),
                    vmem_limit_bytes=vmem),
            )(x_bf, w_fused, b_fused)

        try:
            # Invariant weights/bias: single-buffer them (constant index_map —
            # the default second pipeline buffer would never be used).
            out = call_grid(pl.Buffered(1))
        except Exception:  # pragma: no cover - Pallas versions rejecting buffer_count=1
            out = call_grid(None)

    return out if CP == C else out[:, :C]


def _reference(x, expert_w, expert_b, gate_w, gate_b):
    # pure-JAX reference mirroring the PyTorch forward
    y = jnp.einsum("bd,edc->bec", x, expert_w) + expert_b[:, 0, :][None]   # (B, E, C)
    p = jax.nn.softmax(x @ gate_w + gate_b.reshape(1, -1), axis=1)         # (B, E)
    s = jnp.sum(p[:, :, None] * y, axis=1)                                 # (B, C)
    return jax.nn.softmax(s, axis=1)


def _bf16_round(a):
    return a.astype(jnp.bfloat16).astype(jnp.float32)


if __name__ == "__main__":
    B, D, E, C = 8, 32, 4, 8  # batch, input features, num_experts, num_classes

    key = jax.random.PRNGKey(0)
    k_x, k_we, k_be, k_wg, k_bg, k_x2 = jax.random.split(key, 6)

    x = jax.random.normal(k_x, (B, D), dtype=jnp.float32)
    # deterministic "nn.Linear"-style init (uniform in +/- 1/sqrt(fan_in))
    lim = 1.0 / jnp.sqrt(jnp.float32(D))
    expert_w = jax.random.uniform(k_we, (E, D, C), jnp.float32, -lim, lim)
    expert_b = jax.random.uniform(k_be, (E, 1, C), jnp.float32, -lim, lim)
    gate_w = jax.random.uniform(k_wg, (D, E), jnp.float32, -lim, lim)
    gate_b = jax.random.uniform(k_bg, (1, E), jnp.float32, -lim, lim)

    # --- small batch: gridless single shot ---
    out = jax.block_until_ready(
        moe_pre_softmax_expectation(x, expert_w, expert_b, gate_w, gate_b))
    assert out.shape == (B, C)
    # Tight check against a reference fed the same bf16-rounded activations/weights
    # (what the MXU consumes); looser check against the full-f32 reference.
    ref_bf = _reference(_bf16_round(x), _bf16_round(expert_w), expert_b,
                        _bf16_round(gate_w), gate_b)
    ref_f32 = _reference(x, expert_w, expert_b, gate_w, gate_b)
    assert jnp.allclose(out, ref_bf, atol=2e-3), "mismatch vs bf16-rounded reference"
    assert jnp.allclose(out, ref_f32, atol=3e-2), "mismatch vs f32 reference"
    assert jnp.allclose(jnp.sum(out, axis=1), 1.0, atol=1e-5), "rows must sum to 1"

    # --- large batch: 512-row batch tiles, resident single-buffered fused weights ---
    B2, block_b = 1024, 512
    x2 = jax.random.normal(k_x2, (B2, D), dtype=jnp.float32)
    out2 = jax.block_until_ready(
        moe_pre_softmax_expectation(x2, expert_w, expert_b, gate_w, gate_b,
                                    block_b=block_b))
    assert out2.shape == (B2, C)
    ref2_bf = _reference(_bf16_round(x2), _bf16_round(expert_w), expert_b,
                         _bf16_round(gate_w), gate_b)
    assert jnp.allclose(out2, ref2_bf, atol=2e-3), "mismatch vs reference (grid path)"
    assert jnp.allclose(jnp.sum(out2, axis=1), 1.0, atol=1e-5), "rows must sum to 1 (grid)"

    print("KERNEL_OK")
</pallas_src>

<mosaic_0001>
module attributes {stable_mosaic.version = 11 : i64} {
  func.func @_moe_fused_kernel(%arg0: memref<8x32xbf16, #tpu.memory_space<vmem>>, %arg1: memref<32x640xbf16, #tpu.memory_space<vmem>>, %arg2: memref<1x640xf32, #tpu.memory_space<vmem>>, %arg3: memref<8x128xf32, #tpu.memory_space<vmem>>) attributes {dimension_semantics = [], scalar_prefetch = 0 : i64, scratch_operands = 0 : i64, tpu.core_type = #tpu.core_type<tc>} {
    %c0 = arith.constant 0 : index
    %c0_0 = arith.constant 0 : index
    %0 = vector.load %arg0[%c0, %c0_0] : memref<8x32xbf16, #tpu.memory_space<vmem>>, vector<8x32xbf16>
    %c0_1 = arith.constant 0 : index
    %c0_2 = arith.constant 0 : index
    %1 = vector.load %arg1[%c0_1, %c0_2] : memref<32x640xbf16, #tpu.memory_space<vmem>>, vector<32x640xbf16>
    %cst = arith.constant dense<0.000000e+00> : vector<8x640xf32>
    %2 = tpu.matmul %0, %1, %cst {dimension_numbers = #tpu.dot_dimension_numbers<[1], [0], [0], [1], [0, 0, 1, 1], [], []>} : vector<8x32xbf16>, vector<32x640xbf16>, vector<8x640xf32> -> vector<8x640xf32>
    %c0_3 = arith.constant 0 : index
    %c0_4 = arith.constant 0 : index
    %3 = vector.load %arg2[%c0_3, %c0_4] : memref<1x640xf32, #tpu.memory_space<vmem>>, vector<1x640xf32>
    %4 = vector.broadcast %3 : vector<1x640xf32> to vector<8x640xf32>
    %5 = arith.addf %2, %4 : vector<8x640xf32>
    %6 = vector.extract_strided_slice %5 {offsets = [0, 0], sizes = [8, 128], strides = [1, 1]} : vector<8x640xf32> to vector<8x128xf32>
    %cst_5 = arith.constant dense<0xFF800000> : vector<8xf32>
    %7 = vector.multi_reduction <maximumf>, %6, %cst_5 [1] : vector<8x128xf32> to vector<8xf32>
    %8 = vector.shape_cast %7 : vector<8xf32> to vector<8x1xf32>
    %9 = vector.broadcast %8 : vector<8x1xf32> to vector<8x128xf32>
    %10 = arith.subf %6, %9 : vector<8x128xf32>
    %11 = math.exp %10 : vector<8x128xf32>
    %cst_6 = arith.constant dense<0.000000e+00> : vector<8xf32>
    %12 = vector.multi_reduction <add>, %11, %cst_6 [1] : vector<8x128xf32> to vector<8xf32>
    %13 = vector.shape_cast %12 : vector<8xf32> to vector<8x1xf32>
    %14 = tpu.reciprocal %13 : vector<8x1xf32> -> vector<8x1xf32>
    %15 = vector.broadcast %14 : vector<8x1xf32> to vector<8x128xf32>
    %16 = arith.mulf %11, %15 : vector<8x128xf32>
    %17 = vector.extract_strided_slice %16 {offsets = [0, 0], sizes = [8, 1], strides = [1, 1]} : vector<8x128xf32> to vector<8x1xf32>
    %18 = vector.extract_strided_slice %5 {offsets = [0, 128], sizes = [8, 128], strides = [1, 1]} : vector<8x640xf32> to vector<8x128xf32>
    %19 = vector.broadcast %17 : vector<8x1xf32> to vector<8x128xf32>
    %20 = arith.mulf %19, %18 : vector<8x128xf32>
    %21 = vector.extract_strided_slice %16 {offsets = [0, 1], sizes = [8, 1], strides = [1, 1]} : vector<8x128xf32> to vector<8x1xf32>
    %22 = vector.extract_strided_slice %5 {offsets = [0, 256], sizes = [8, 128], strides = [1, 1]} : vector<8x640xf32> to vector<8x128xf32>
    %23 = vector.broadcast %21 : vector<8x1xf32> to vector<8x128xf32>
    %24 = arith.mulf %23, %22 : vector<8x128xf32>
    %25 = arith.addf %20, %24 : vector<8x128xf32>
    %26 = vector.extract_strided_slice %16 {offsets = [0, 2], sizes = [8, 1], strides = [1, 1]} : vector<8x128xf32> to vector<8x1xf32>
    %27 = vector.extract_strided_slice %5 {offsets = [0, 384], sizes = [8, 128], strides = [1, 1]} : vector<8x640xf32> to vector<8x128xf32>
    %28 = vector.broadcast %26 : vector<8x1xf32> to vector<8x128xf32>
    %29 = arith.mulf %28, %27 : vector<8x128xf32>
    %30 = arith.addf %25, %29 : vector<8x128xf32>
    %31 = vector.extract_strided_slice %16 {offsets = [0, 3], sizes = [8, 1], strides = [1, 1]} : vector<8x128xf32> to vector<8x1xf32>
    %32 = vector.extract_strided_slice %5 {offsets = [0, 512], sizes = [8, 128], strides = [1, 1]} : vector<8x640xf32> to vector<8x128xf32>
    %33 = vector.broadcast %31 : vector<8x1xf32> to vector<8x128xf32>
    %34 = arith.mulf %33, %32 : vector<8x128xf32>
    %35 = arith.addf %30, %34 : vector<8x128xf32>
    %36 = tpu.iota {dimensions = array<i32: 1>} : vector<8x128xi32>
    %c8_i32 = arith.constant 8 : i32
    %37 = vector.broadcast %c8_i32 : i32 to vector<8x128xi32>
    %38 = arith.cmpi slt, %36, %37 : vector<8x128xi32>
    %cst_7 = arith.constant 0xFF800000 : f32
    %39 = vector.broadcast %cst_7 : f32 to vector<8x128xf32>
    %40 = arith.select %38, %35, %39 : vector<8x128xi1>, vector<8x128xf32>
    %cst_8 = arith.constant dense<0xFF800000> : vector<8xf32>
    %41 = vector.multi_reduction <maximumf>, %40, %cst_8 [1] : vector<8x128xf32> to vector<8xf32>
    %42 = vector.shape_cast %41 : vector<8xf32> to vector<8x1xf32>
    %43 = vector.broadcast %42 : vector<8x1xf32> to vector<8x128xf32>
    %44 = arith.subf %40, %43 : vector<8x128xf32>
    %45 = math.exp %44 : vector<8x128xf32>
    %cst_9 = arith.constant dense<0.000000e+00> : vector<8xf32>
    %46 = vector.multi_reduction <add>, %45, %cst_9 [1] : vector<8x128xf32> to vector<8xf32>
    %47 = vector.shape_cast %46 : vector<8xf32> to vector<8x1xf32>
    %48 = tpu.reciprocal %47 : vector<8x1xf32> -> vector<8x1xf32>
    %49 = vector.broadcast %48 : vector<8x1xf32> to vector<8x128xf32>
    %50 = arith.mulf %45, %49 : vector<8x128xf32>
    %c0_10 = arith.constant 0 : index
    %c0_11 = arith.constant 0 : index
    %51 = vector.load %arg3[%c0_10, %c0_11] : memref<8x128xf32, #tpu.memory_space<vmem>>, vector<8x128xf32>
    tpu.vector_store %arg3[%c0_10, %c0_11], %50 {strides = array<i32>} : memref<8x128xf32, #tpu.memory_space<vmem>>, vector<8x128xf32>,
    return
  }
}

</mosaic_0001>

<bundles_post_ra>
// kernel: tpu_custom_call.1
= control target key start
LH: loop header
LB: loop body
LE: loop exit
PB: predicated region body
PF: predicated region fallthrough
CT: control target
= control target key end

     0   :  { %8 = vsyncpa [#allocation3], 0  ;;  %s530_s0 = inlined_call_operand.hbm [shape: bf16[8,32], index: 0, kind: input, shape index: {}]   ;;  %s531_s1 = inlined_call_operand.hbm [shape: bf16[32,640], index: 1, kind: input, shape index: {}]   ;;  %s532_s2 = inlined_call_operand.hbm [shape: f32[1,640], index: 2, kind: input, shape index: {}]   ;;  %s533_s3 = inlined_call_operand.hbm [shape: f32[8,128], index: 3, kind: output, shape index: {}]  }
   0x1   :  { %9 = vsyncpa [#allocation6], 0  ;;  %s26_s14 = sshll.u32 %s531_s1, 4  ;;  %s27_s14 = int_to_ptr.hbm [resolvable:$true] %s26_s14 }
   0x2   :  { %10 = vsyncpa [#allocation4], 0  ;;  %s476_s15 = smov [#allocation5]   ;;  %s16_s19 = sshll.u32 %s530_s0, 4  ;;  %s17_s19 = int_to_ptr.hbm [resolvable:$true] %s16_s19 }
   0x3   :  { %s28_s16 = sshll.u32 %s476_s15, 4  ;;  %s477_s20 = smov 320   ;;  %s29_s16 = int_to_ptr.vmem [resolvable:$true] %s28_s16 }
   0x4   :  { %s478_s21 = smov 20   ;;  %s479_s22 = smov [#allocation2]  }
   0x5   :  { %34 = dma.hbm_to_vmem [thread:$0]  %s27_s14, 1280, %s29_s16, [#allocation6], %s477_s20, %s477_s20, %s478_s21  }
   0x6   :  { %s18_s23 = sshll.u32 %s479_s22, 4  ;;  %s40_s26 = sshll.u32 %s532_s2, 4  ;;  %s19_s23 = int_to_ptr.vmem [resolvable:$true] %s18_s23  ;;  %s41_s26 = int_to_ptr.hbm [resolvable:$true] %s40_s26 }
   0x7   :  { %21 = dma.hbm_to_vmem [thread:$0]  %s17_s19, 64, %s19_s23, [#allocation3]  }
   0x8   :  { %s480_s1 = smov [#allocation7]  }
   0x9   :  { %s42_s27 = sshll.u32 %s480_s1, 4  ;;  %s43_s27 = int_to_ptr.vmem [resolvable:$true] %s42_s27 }
   0xa   :  { %45 = dma.hbm_to_vmem [thread:$0]  %s41_s26, 80, %s43_s27, [#allocation6]  }
   0xb   :  { %470 = dma.done.wait [#allocation3], 64  }
   0xc   :  { %471 = vsyncadd [#allocation3], 4294967232 }
   0xd   :  { %472 = dma.done.wait [#allocation6], 1360  }
   0xe   :  { %473 = vsyncadd [#allocation6], 4294965936  ;;  %v318_v0 = vld [vmem:[#allocation5 + $0x28] sm:$0xf]  ;;  %v348_v1 = vld [vmem:[#allocation5 + $0x38] sm:$0xf0] }
   0xf   :  { %v298_v2 = vld [vmem:[#allocation5] sm:$0xf]  ;;  %v319_v3 = vor.u32 %v348_v1, %v318_v0  ;;  %v343_v4 = vld [vmem:[#allocation5 + $0x10] sm:$0xf0]  ;;  %v59_v6 = vld [vmem:[#allocation2] sm:$0xf] }
  0x10   :  { %v299_v5 = vor.u32 %v343_v4, %v298_v2  ;;  %vm136_vm0 = vcmask 261120   ;;  %v516_v7 = vld [vmem:[#allocation7] sm:$0x1f]  ;;  %v328_v13 = vld [vmem:[#allocation5 + $0x44] sm:$0xf0]  ;;  %v481_v40 = vmov 2  }
  0x11   :  { %146 = vmatpush.bf16.msra.mxu0 %v319_v3  ;;  %v74_v8 = vperm.slane %v516_v7, 0  ;;  %v347_v12 = vld [vmem:[#allocation5 + $0x34] sm:$0xf]  ;;  %v342_v14 = vld [vmem:[#allocation5 + $0xc] sm:$0xf]  ;;  %363 = vset.pattern.permute.xlu2 %v481_v40  ;;  %v482_v41 = vmov 0  }
  0x12   :  { %v331_v15 = vor.u32 %v347_v12, %v328_v13  ;;  %v308_v16 = vld [vmem:[#allocation5 + $0x1c] sm:$0xf0]  ;;  %v334_v17 = vld [vmem:[#allocation5 + $0x38] sm:$0xf]  ;;  %v350_v18 = vld [vmem:[#allocation5 + $0x48] sm:$0xf0]  ;;  %361 = vset.pattern.permute.xlu1 %v482_v41 }
  0x13   :  { %v335_v19 = vor.u32 %v350_v18, %v334_v17  ;;  %v314_v20 = vld [vmem:[#allocation5 + $0x10] sm:$0xf]  ;;  %v345_v21 = vld [vmem:[#allocation5 + $0x20] sm:$0xf0]  ;;  %v311_v23 = vor.u32 %v342_v14, %v308_v16  ;;  %v306_v25 = vld [vmem:[#allocation5 + $0x8] sm:$0xf] }
  0x14   :  { %v326_v22 = vld [vmem:[#allocation5 + $0x30] sm:$0xf]  ;;  %185 = vmatpush.bf16.msra.mxu3 %v331_v15  ;;  %v349_v24 = vld [vmem:[#allocation5 + $0x40] sm:$0xf0]  ;;  %v344_v26 = vld [vmem:[#allocation5 + $0x18] sm:$0xf0]  ;;  %v315_v27 = vor.u32 %v345_v21, %v314_v20 }
  0x15   :  { %147 = vmatpush.bf16.msra.mxu0 %v299_v5  ;;  %v327_v28 = vor.u32 %v349_v24, %v326_v22  ;;  %v346_v29 = vld [vmem:[#allocation5 + $0x2c] sm:$0xf]  ;;  %v320_v30 = vld [vmem:[#allocation5 + $0x3c] sm:$0xf0]  ;;  %v307_v32 = vor.u32 %v344_v26, %v306_v25  ;;  %v341_v37 = vld [vmem:[#allocation5 + $0x4] sm:$0xf] }
  0x16   :  { %v323_v31 = vor.u32 %v346_v29, %v320_v30  ;;  %v300_v38 = vld [vmem:[#allocation5 + $0x14] sm:$0xf0]  ;;  %v483_v42 = vmov 3   ;;  %v484_v57 = vmov 1   ;;  %v75_v2 = vperm.slane %v516_v7, 1  ;;  %s485_s0 = smov [#allocation8]  }
  0x17   :  { %172 = vmatpush.bf16.msra.mxu2 %v327_v28  ;;  %v303_v39 = vor.u32 %v341_v37, %v300_v38  ;;  %365 = vset.pattern.permute.xlu0 %v483_v42  ;;  %v76_v3 = vperm.slane %v516_v7, 2  ;;  %v77_v4 = vperm.slane %v516_v7, 3  ;;  %v78_v5 = vperm.slane %v516_v7, 4  ;;  %s283_s2 = sshll.u32 %s485_s0, 4  ;;  %s285_s30 = sshll.u32 %s533_s3, 4  ;;  %s284_s2 = int_to_ptr.vmem [resolvable:$true] %s283_s2  ;;  %s286_s30 = int_to_ptr.hbm [resolvable:$true] %s285_s30 }
  0x18   :  { %336 = vmatmul.msk.bf16.vlgmr.msra.gmra.mxu0 %vm136_vm0, %v59_v6  ;;  %186 = vmatpush.bf16.msra.mxu3 %v311_v23 }
  0x19   :  { %198 = vmatpush.bf16.msrb.mxu0 %v335_v19  ;;  %159 = vmatpush.bf16.msra.mxu1 %v323_v31 }
  0x1b   :  { %339 = vmatmul.msk.bf16.vlgmr.msra.gmra.mxu3 %vm136_vm0, %v59_v6  ;;  %173 = vmatpush.bf16.msra.mxu2 %v307_v32 }
  0x1d   :  { %199 = vmatpush.bf16.msrb.mxu0 %v315_v27  ;;  %160 = vmatpush.bf16.msra.mxu1 %v303_v39 }
  0x1e   :  { %338 = vmatmul.msk.bf16.vlgmr.msra.gmra.mxu2 %vm136_vm0, %v59_v6 }
  0x20   :  { %337 = vmatmul.msk.bf16.vlgmr.msra.gmra.mxu1 %vm136_vm0, %v59_v6 }
  0x28   :  { %340 = vmatmul.msk.bf16.vlgmr.msrb.gmra.mxu0 %vm136_vm0, %v59_v6 }
  0x95   :  { %v149_v9 = vpop.f32.mrf.mxu0 }
  0x96   :  { %v150_v10 = vadd.f32 %v149_v9, %v74_v8  ;;  %v251_v9 = vlaneseq }
  0x98   :  { %205 = vmax.xlane.f32.xlu0 %v150_v10  ;;  %v252_v16 = vand.u32 127, %v251_v9 }
  0x9a   :  { %vm253_vm5 = vcmp.lt.s32.totalorder %v252_v16, 8 }
  0x9d   :  { %v151_v11 = vpop.f32.mrf.mxu0  ;;  %v162_v62 = vpop.f32.mrf.mxu1 }
  0x9e   :  { %v188_v43 = vpop.f32.mrf.mxu3  ;;  %v163_v6 = vadd.f32 %v162_v62, %v75_v2 }
  0xa1   :  { %v175_v60 = vpop.f32.mrf.mxu2 }
  0xa2   :  { %v176_v8 = vadd.f32 %v175_v60, %v76_v3 }
  0xa5   :  { %v201_v58 = vpop.f32.mrf.mxu0  ;;  %v164_v63 = vpop.f32.mrf.mxu1 }
  0xa6   :  { %v190_v45 = vpop.f32.mrf.mxu3  ;;  %v202_v12 = vadd.f32 %v201_v58, %v78_v5 }
  0xa9   :  { %v177_v61 = vpop.f32.mrf.mxu2 }
  0xad   :  { %v203_v59 = vpop.f32.mrf.mxu0 }
 0x10b   :  { %v206_v33 = vpop.xlane.xlu0 %205 }
 0x10c   :  { %v207_v34 = vsub.f32 %v150_v10, %v206_v33  ;;  %v189_v10 = vadd.f32 %v188_v43, %v77_v4 }
 0x10e   :  { %v208_v35 = vmul.f32 1.442695, %v207_v34 }
 0x110   :  { %366 = vpow2.f32 %v208_v35 }
 0x116   :  { %v367_v36 = vpop.eup %366 }
 0x117   :  { %210 = vadd.xlane.f32.xlu0 %v367_v36 }
 0x18a   :  { %v211_v44 = vpop.xlane.xlu0 %210 }
 0x18b   :  { %368 = vrcp.f32 %v211_v44  ;;  %v223_v49 = vand.u32 2147483648, %v211_v44  ;;  %v221_v51 = vand.u32 2147483647, %v211_v44  ;;  %vm217_vm2 = vweird.f32 %v211_v44 }
 0x18d   :  { %v224_v53 = vor.u32 1.1754944e-38, %v223_v49  ;;  %vm222_vm4 = vcmp.eq.f32.partialorder %v221_v51, 8.507059e+37 }
 0x191   :  { %v369_v46 = vpop.eup %368 }
 0x192   :  { %v213_v47 = vmul.f32 %v369_v46, %v211_v44  ;;  %vm218_vm1 = vweird.f32 %v369_v46 }
 0x193   :  { %vm219_vm3 = vmor %vm217_vm2, %vm218_vm1 }
 0x194   :  { %v214_v48 = vsub.f32 1.0, %v213_v47 }
 0x196   :  { %v215_v50 = vmul.f32 %v369_v46, %v214_v48 }
 0x198   :  { %v216_v52 = vadd.f32 %v369_v46, %v215_v50 }
 0x19a   :  { %v220_v54 = vsel %vm219_vm3, %v369_v46, %v216_v52 }
 0x19b   :  { %v225_v55 = vsel %vm222_vm4, %v224_v53, %v220_v54 }
 0x19c   :  { %v226_v56 = vmul.f32 %v367_v36, %v225_v55 }
 0x19e   :  { %240 = vperm.xlu2 %363, %v226_v56   ;;  %229 = vperm.xlu1 %361, %v226_v56  }
 0x1a6   :  { %364 = vset.pattern.permute.xlu2 %v483_v42  ;;  %362 = vset.pattern.permute.xlu1 %v484_v57 }
 0x1a7   :  { %246 = vperm.xlu2 %364, %v226_v56   ;;  %234 = vperm.xlu1 %362, %v226_v56  }
 0x1f8   :  { %v241_v1 = vpop.permute.xlu2 %240 }
 0x1f9   :  { %v243_v17 = vmul.f32 %v241_v1, %v189_v10 }
 0x201   :  { %v247_v15 = vpop.permute.xlu2 %246 }
 0x202   :  { %v249_v19 = vmul.f32 %v247_v15, %v202_v12 }
 0x210   :  { %v230_v0 = vpop.permute.xlu1 %229 }
 0x211   :  { %v232_v13 = vmul.f32 %v230_v0, %v163_v6 }
 0x219   :  { %v235_v11 = vpop.permute.xlu1 %234 }
 0x21a   :  { %v237_v14 = vmul.f32 %v235_v11, %v176_v8 }
 0x21c   :  { %v238_v18 = vadd.f32 %v237_v14, %v232_v13 }
 0x21e   :  { %v244_v20 = vadd.f32 %v243_v17, %v238_v18 }
 0x220   :  { %v250_v21 = vadd.f32 %v249_v19, %v244_v20 }
 0x222   :  { %v254_v22 = vsel %vm253_vm5, %v250_v21, -inf }
 0x223   :  { %255 = vmax.xlane.f32.xlu0 %v254_v22 }
 0x296   :  { %v256_v23 = vpop.xlane.xlu0 %255 }
 0x297   :  { %v257_v7 = vsub.f32 %v254_v22, %v256_v23 }
 0x299   :  { %v258_v24 = vmul.f32 1.442695, %v257_v7 }
 0x29b   :  { %370 = vpow2.f32 %v258_v24 }
 0x2a1   :  { %v371_v25 = vpop.eup %370 }
 0x2a2   :  { %260 = vadd.xlane.f32.xlu1 %v371_v25 }
 0x315   :  { %v261_v26 = vpop.xlane.xlu1 %260 }
 0x316   :  { %372 = vrcp.f32 %v261_v26  ;;  %v273_v30 = vand.u32 2147483648, %v261_v26  ;;  %v271_v32 = vand.u32 2147483647, %v261_v26  ;;  %vm267_vm7 = vweird.f32 %v261_v26 }
 0x318   :  { %v274_v34 = vor.u32 1.1754944e-38, %v273_v30  ;;  %vm272_vm9 = vcmp.eq.f32.partialorder %v271_v32, 8.507059e+37 }
 0x31c   :  { %v373_v27 = vpop.eup %372 }
 0x31d   :  { %v263_v28 = vmul.f32 %v373_v27, %v261_v26  ;;  %vm268_vm6 = vweird.f32 %v373_v27 }
 0x31e   :  { %vm269_vm8 = vmor %vm267_vm7, %vm268_vm6 }
 0x31f   :  { %v264_v29 = vsub.f32 1.0, %v263_v28 }
 0x321   :  { %v265_v31 = vmul.f32 %v373_v27, %v264_v29 }
 0x323   :  { %v266_v33 = vadd.f32 %v373_v27, %v265_v31 }
 0x325   :  { %v270_v35 = vsel %vm269_vm8, %v373_v27, %v266_v33 }
 0x326   :  { %v275_v36 = vsel %vm272_vm9, %v274_v34, %v270_v35 }
 0x327   :  { %v276_v37 = vmul.f32 %v371_v25, %v275_v36 }
 0x329   :  { %277 = vst [vmem:[#allocation8] sm:$0xff] %v276_v37 }
 0x32a   :  { %288 = dma.vmem_to_hbm [thread:$0]  %s284_s2, 128, %s286_s30, [#allocation4]  }
 0x32b   :  { %474 = dma.done.wait [#allocation4], 128  }
 0x32c   :  { %475 = vsyncadd [#allocation4], 4294967168 }
 0x32d   :  { %293 = vsyncpa [#allocation3], 1 }
 0x32e   :  { %294 = vsyncpa [#allocation6], 1 }
 0x32f   :  { %295 = vsyncpa [#allocation4], 1 }

</bundles_post_ra>
